<compile_context>
chip_gen: v7x
topology: tpu7x:2x2x1
jax: 0.10.0
libtpu: 0.0.40
codegen_flags: <defaults>
</compile_context>

<pallas_src>
import functools
import math

import jax
import jax.numpy as jnp
from jax.experimental import pallas as pl
from jax.experimental.pallas import tpu as pltpu


def _h_swish_kernel(x_ref, o_ref):
    x = x_ref[...]
    # Compute in (at least) f32; store back in the I/O dtype.
    cd = jnp.promote_types(x.dtype, jnp.float32)
    xf = x.astype(cd)
    y = xf * (jnp.clip(xf + 3.0, 0.0, 6.0) * (1.0 / 6.0))
    o_ref[...] = y.astype(o_ref.dtype)


def _round_up(v, m):
    return -(-v // m) * m


def h_swish_ref(x):
    """Plain-JAX reference mirroring the PyTorch forward."""
    return x * jnp.clip(x + 3.0, 0.0, 6.0) / 6.0


_LANE_CANDIDATES = (2048, 1024, 512, 256, 128)


@functools.partial(jax.jit, static_argnames=("min_pallas_elements",))
def h_swish(x, *, min_pallas_elements=262144):
    """Elementwise h_swish for any shape / float dtype via lane-dense 2-D tiling."""
    orig_shape = x.shape
    total = math.prod(orig_shape)

    # Fast path: empty or tiny tensors — a fused XLA elementwise op beats the
    # kernel launch (and any pad/slice copies) on all generations.
    if total == 0 or total < min_pallas_elements:
        return h_swish_ref(x)

    itemsize = jnp.dtype(x.dtype).itemsize
    sub = max(8, 32 // itemsize)  # sublane multiple: f32->8, bf16/f16->16, 8-bit->32

    # Pick a lane width that divides the element count exactly -> no pad, no slice.
    lanes = None
    for cand in _LANE_CANDIDATES:
        if total % cand == 0:
            lanes = cand
            break
    padded = lanes is None
    if padded:
        lanes = 1024

    rows = -(-total // lanes)
    x_flat = jnp.ravel(x)
    if padded:
        # Rare fallback (total % 128 != 0): pad < lanes elements.
        x_flat = jnp.pad(x_flat, (0, rows * lanes - total))
    x2 = x_flat.reshape(rows, lanes)

    # Block rows: target ~4 MiB blocks, but cap so the grid keeps >= 4 steps
    # (lets dimension_semantics=("parallel",) shard across TensorCores).
    target_block_bytes = 4 * 1024 * 1024
    block_rows = max(sub, (target_block_bytes // (lanes * itemsize)) // sub * sub)
    if rows > 4 * sub:
        block_rows = min(block_rows, max(sub, _round_up(-(-rows // 4), sub)))
    if block_rows >= rows:
        block_rows = rows  # single full-extent block (allowed even if not % sub)
    grid = (-(-rows // block_rows),)  # ragged last block handled by Pallas

    out2 = pl.pallas_call(
        _h_swish_kernel,
        out_shape=jax.ShapeDtypeStruct((rows, lanes), x.dtype),
        grid_spec=pltpu.PrefetchScalarGridSpec(
            num_scalar_prefetch=0,
            grid=grid,
            in_specs=[pl.BlockSpec((block_rows, lanes), lambda i: (i, 0))],
            out_specs=pl.BlockSpec((block_rows, lanes), lambda i: (i, 0)),
        ),
        compiler_params=pltpu.CompilerParams(
            dimension_semantics=("parallel",),
            vmem_limit_bytes=48 * 1024 * 1024,
        ),
        # Alias only when the operand is the fresh padded intermediate; aliasing
        # a bitcast view of the caller's (non-donated) argument would make XLA
        # insert a defensive full copy.
        input_output_aliases={0: 0} if padded else {},
    )(x2)

    out_flat = out2.reshape(-1)
    if padded:
        out_flat = out_flat[:total]
    return out_flat.reshape(orig_shape)


if __name__ == "__main__":
    key = jax.random.PRNGKey(0)
    k1, k2, k3 = jax.random.split(key, 3)

    # Primary test: small NCHW activation tensor (as used inside Resnet50_CA);
    # force the Pallas path so the kernel itself is exercised.
    x = jax.random.normal(k1, (2, 4, 16, 16), dtype=jnp.float32) * 4.0
    out = jax.block_until_ready(h_swish(x, min_pallas_elements=0))
    ref = h_swish_ref(x)
    assert out.shape == x.shape and out.dtype == x.dtype
    assert jnp.allclose(out, ref, atol=1e-6, rtol=1e-6), (
        f"max abs err {jnp.max(jnp.abs(out - ref))}")

    # Default heuristics: large enough to take the multi-block, no-pad Pallas path.
    xl = jax.random.normal(k2, (8, 64, 32, 32), dtype=jnp.float32) * 4.0
    outl = jax.block_until_ready(h_swish(xl))
    assert jnp.allclose(outl, h_swish_ref(xl), atol=1e-6, rtol=1e-6), (
        f"max abs err {jnp.max(jnp.abs(outl - h_swish_ref(xl)))}")

    # Ragged shape exercising the (rare) pad / slice fallback.
    xr = jax.random.normal(k3, (3, 5, 7, 13), dtype=jnp.float32) * 4.0
    outr = jax.block_until_ready(h_swish(xr, min_pallas_elements=0))
    assert jnp.allclose(outr, h_swish_ref(xr), atol=1e-6, rtol=1e-6), (
        f"max abs err {jnp.max(jnp.abs(outr - h_swish_ref(xr)))}")

    # bf16 path: I/O stays bf16, compute in f32 inside the kernel.
    xb = x.astype(jnp.bfloat16)
    outb = jax.block_until_ready(h_swish(xb, min_pallas_elements=0))
    assert outb.dtype == jnp.bfloat16
    assert jnp.allclose(outb.astype(jnp.float32),
                        h_swish_ref(xb.astype(jnp.float32)),
                        atol=2e-2, rtol=2e-2)

    # Small-tensor fast path (pooled (N, C, 1, 1) attention map) and zero-size input.
    xs = jax.random.normal(k1, (2, 64, 1, 1), dtype=jnp.float32)
    assert jnp.allclose(jax.block_until_ready(h_swish(xs)), h_swish_ref(xs),
                        atol=1e-6, rtol=1e-6)
    xe = jnp.zeros((0, 4, 16, 16), dtype=jnp.float32)
    assert h_swish(xe).shape == xe.shape

    print("KERNEL_OK")
</pallas_src>

<mosaic_0001>
module attributes {stable_mosaic.version = 11 : i64} {
  func.func @_h_swish_kernel(%arg0: i32, %arg1: memref<1x2048xf32, #tpu.memory_space<vmem>>, %arg2: memref<1x2048xf32, #tpu.memory_space<vmem>>) attributes {dimension_semantics = [#tpu.dimension_semantics<parallel>], iteration_bounds = array<i64: 1>, scalar_prefetch = 0 : i64, scratch_operands = 0 : i64, tpu.core_type = #tpu.core_type<tc>, window_params = [{transform_indices = @transform_0, window_bounds = array<i64: 1, 2048>}, {transform_indices = @transform_1, window_bounds = array<i64: 1, 2048>}]} {
    %c0 = arith.constant 0 : index
    %c0_0 = arith.constant 0 : index
    %0 = vector.load %arg1[%c0, %c0_0] : memref<1x2048xf32, #tpu.memory_space<vmem>>, vector<1x2048xf32>
    %cst = arith.constant 3.000000e+00 : f32
    %1 = vector.broadcast %cst : f32 to vector<1x2048xf32>
    %2 = arith.addf %0, %1 : vector<1x2048xf32>
    %cst_1 = arith.constant 0.000000e+00 : f32
    %cst_2 = arith.constant 6.000000e+00 : f32
    %3 = vector.broadcast %cst_1 : f32 to vector<1x2048xf32>
    %4 = arith.maximumf %3, %2 : vector<1x2048xf32>
    %5 = vector.broadcast %cst_2 : f32 to vector<1x2048xf32>
    %6 = arith.minimumf %5, %4 : vector<1x2048xf32>
    %cst_3 = arith.constant 0.166666672 : f32
    %7 = vector.broadcast %cst_3 : f32 to vector<1x2048xf32>
    %8 = arith.mulf %6, %7 : vector<1x2048xf32>
    %9 = arith.mulf %0, %8 : vector<1x2048xf32>
    %c0_4 = arith.constant 0 : index
    %c0_5 = arith.constant 0 : index
    %10 = vector.load %arg2[%c0_4, %c0_5] : memref<1x2048xf32, #tpu.memory_space<vmem>>, vector<1x2048xf32>
    tpu.vector_store %arg2[%c0_4, %c0_5], %9 {strides = array<i32>} : memref<1x2048xf32, #tpu.memory_space<vmem>>, vector<1x2048xf32>,
    return
  }
  func.func @transform_0(%arg0: i32) -> (i32, i32) {
    %c0_i32 = arith.constant 0 : i32
    %c0_i32_0 = arith.constant 0 : i32
    return %arg0, %c0_i32 : i32, i32
  }
  func.func @transform_1(%arg0: i32) -> (i32, i32) {
    %c0_i32 = arith.constant 0 : i32
    %c0_i32_0 = arith.constant 0 : i32
    return %arg0, %c0_i32 : i32, i32
  }
}

</mosaic_0001>

<bundles_post_ra>
// kernel: h_swish.1
= control target key start
LH: loop header
LB: loop body
LE: loop exit
PB: predicated region body
PF: predicated region fallthrough
CT: control target
= control target key end

     0   :  { %s48_s0 = inlined_call_operand.vmem [shape: f32[1,2048], index: 0, kind: input, shape index: {}]   ;;  %s49_s1 = inlined_call_operand.vmem [shape: f32[1,2048], index: 1, kind: output, shape index: {}]  }
   0x1   :  { %v8_v0 = vld [vmem:[%s48_s0] sm:$0xff]  ;;  %v9_v1 = vld [vmem:[%s48_s0 + $0x8] sm:$0xff] }
   0x2   :  { %v10_v2 = vadd.f32 3.0, %v8_v0  ;;  %v11_v3 = vadd.f32 3.0, %v9_v1 }
   0x4   :  { %v12_v4 = vmax.f32 %v10_v2, 0.0  ;;  %v13_v5 = vmax.f32 %v11_v3, 0.0 }
   0x6   :  { %v14_v6 = vmin.f32 %v12_v4, 6.0  ;;  %v15_v7 = vmin.f32 %v13_v5, 6.0 }
   0x8   :  { %v16_v8 = vmul.f32 0.16666667, %v14_v6  ;;  %v17_v9 = vmul.f32 0.16666667, %v15_v7 }
   0xa   :  { %v18_v10 = vmul.f32 %v16_v8, %v8_v0  ;;  %v19_v11 = vmul.f32 %v17_v9, %v9_v1 }
   0xc   :  { %20 = vst [vmem:[%s49_s1] sm:$0xff] %v18_v10  ;;  %21 = vst [vmem:[%s49_s1 + $0x8] sm:$0xff] %v19_v11 }

</bundles_post_ra>
